<compile_context>
chip_gen: v7x
topology: tpu7x:2x2x1
jax: 0.10.0
libtpu: 0.0.40
codegen_flags: <defaults>
</compile_context>

<pallas_src>
import functools

import jax
import jax.numpy as jnp
from jax.experimental import pallas as pl
from jax.experimental.pallas import tpu as pltpu


# ---------------------------------------------------------------------------
# helpers
# ---------------------------------------------------------------------------
def _round_up(x, m):
    return ((x + m - 1) // m) * m


def _apply_act(x, name):
    if name == "relu":
        return jnp.maximum(x, 0.0)
    if name == "sigmoid":
        return jax.nn.sigmoid(x)
    if name in ("none", "linear", "identity"):
        return x
    raise ValueError(f"unknown activation {name!r}")


# ---------------------------------------------------------------------------
# Pallas kernel: whole MLP on one (TILE_N, ...) row tile, all layers fused.
# ---------------------------------------------------------------------------
def _fused_mlp_kernel(*refs, n_in, n_layers, activation, output_activation):
    """Ref order:
         x_0 .. x_{n_in-1},
         W0 split into n_in row-slices, b0,
         (W_i, b_i) for i in 1..n_layers-1,
         out_ref (lane-dense / padded last dim).
    Intermediates are kept as values (VMEM/vregs); nothing round-trips to HBM.
    """
    refs = list(refs)
    o_ref = refs[-1]
    xs = refs[:n_in]
    p = n_in
    w0_parts = refs[p:p + n_in]
    p += n_in
    b0_ref = refs[p]
    p += 1

    # Layer 0: concat(inputs) @ W0  ==  sum_i  x_i @ W0[rows_i]   (concat fused away)
    h = jnp.dot(xs[0][...], w0_parts[0][...], preferred_element_type=jnp.float32)
    for x_ref, w_ref in zip(xs[1:], w0_parts[1:]):
        h = h + jnp.dot(x_ref[...], w_ref[...], preferred_element_type=jnp.float32)
    h = h + b0_ref[...]
    h = _apply_act(h, output_activation if n_layers == 1 else activation)

    # Remaining layers (Dropout is identity in eval mode, so omitted).
    for li in range(1, n_layers):
        w_ref = refs[p]
        b_ref = refs[p + 1]
        p += 2
        h = jnp.dot(h, w_ref[...], preferred_element_type=jnp.float32) + b_ref[...]
        h = _apply_act(h, output_activation if li == n_layers - 1 else activation)

    o_ref[...] = h.astype(o_ref.dtype)


# ---------------------------------------------------------------------------
# Wrapper: builds the grid / BlockSpecs and calls the fused kernel once.
# ---------------------------------------------------------------------------
# Rows per grid step. 1024 rows * (16+16) f32 inputs + (1024,128) f32 output,
# double-buffered, stays far below the scoped-VMEM limit on v5e/v6e/v7x.
_MAX_TILE_N = 1024


def mlpnet_forward(params, inputs, activation="relu", output_activation="sigmoid"):
    """Mirrors MLPNet.forward (inference): concat inputs, then the layer stack."""
    if not isinstance(inputs, (list, tuple)):
        inputs = [inputs]
    n_in = len(inputs)
    n_layers = len(params)
    N = inputs[0].shape[0]
    dtype = inputs[0].dtype

    ws = [w for w, _ in params]
    bs = [b for _, b in params]
    out_dim = ws[-1].shape[1]

    # Lane-dense final output: pad last layer's columns to a multiple of 128
    # so the kernel's store is a full-lane unmasked vst; slice back after.
    out_pad = _round_up(out_dim, 128)
    if out_pad != out_dim:
        ws = ws[:-1] + [jnp.pad(ws[-1], ((0, 0), (0, out_pad - out_dim)))]
        bs = bs[:-1] + [jnp.pad(bs[-1], ((0, out_pad - out_dim),))]

    # Row tiling: large pipelined tiles for big N; single padded tile for small N.
    tile_n = min(_MAX_TILE_N, _round_up(max(N, 8), 8))
    n_pad = _round_up(N, tile_n)
    xs = [jnp.pad(x, ((0, n_pad - N), (0, 0))) if n_pad != N else x for x in inputs]

    # Split W0 along its input (row) axis so torch.cat(inputs, -1) is never built.
    w0_parts = []
    off = 0
    for x in inputs:
        f = x.shape[1]
        w0_parts.append(ws[0][off:off + f, :])
        off += f
    assert off == ws[0].shape[0], "sum of input widths must equal first-layer in_dim"

    call_args = []
    in_specs = []
    # row-tiled activations
    for x in xs:
        call_args.append(x)
        in_specs.append(pl.BlockSpec((tile_n, x.shape[1]), lambda i: (i, 0)))
    # layer-0 weight slices + bias (constant index_map -> DMA'd once, stay resident)
    for w_part in w0_parts:
        call_args.append(w_part)
        in_specs.append(pl.BlockSpec(w_part.shape, lambda i: (0, 0)))
    call_args.append(bs[0].reshape(1, -1))
    in_specs.append(pl.BlockSpec((1, bs[0].shape[0]), lambda i: (0, 0)))
    # remaining layers
    for li in range(1, n_layers):
        call_args.append(ws[li])
        in_specs.append(pl.BlockSpec(ws[li].shape, lambda i: (0, 0)))
        call_args.append(bs[li].reshape(1, -1))
        in_specs.append(pl.BlockSpec((1, bs[li].shape[0]), lambda i: (0, 0)))

    kernel = functools.partial(
        _fused_mlp_kernel,
        n_in=n_in,
        n_layers=n_layers,
        activation=activation,
        output_activation=output_activation,
    )

    # Advisory cost estimate for XLA scheduling around the custom call.
    flops = 2 * N * sum(int(w.shape[0]) * int(w.shape[1]) for w, _ in params)
    transcendentals = N * out_dim if output_activation == "sigmoid" else 0
    bytes_accessed = 4 * (sum(int(x.size) for x in inputs) + N * out_pad
                          + sum(int(w.size) + int(b.size) for w, b in params))

    out = pl.pallas_call(
        kernel,
        out_shape=jax.ShapeDtypeStruct((n_pad, out_pad), dtype),
        grid=(n_pad // tile_n,),
        in_specs=in_specs,
        out_specs=pl.BlockSpec((tile_n, out_pad), lambda i: (i, 0)),
        compiler_params=pltpu.CompilerParams(
            # independent row tiles -> megacore-shardable on v7x, neutral elsewhere
            dimension_semantics=("parallel",),
        ),
        cost_estimate=pl.CostEstimate(
            flops=flops,
            transcendentals=transcendentals,
            bytes_accessed=bytes_accessed,
        ),
    )(*call_args)

    return out[:N, :out_dim]


# ---------------------------------------------------------------------------
# Parameter construction (shapes match the nn.Linear stack).
# ---------------------------------------------------------------------------
def xavier_uniform(key, shape, dtype=jnp.float32):
    fan_in, fan_out = shape
    limit = (6.0 / (fan_in + fan_out)) ** 0.5
    return jax.random.uniform(key, shape, dtype, minval=-limit, maxval=limit)


def init_mlpnet_params(key, in_dim, hiddens, out_dim):
    params = []
    dims = [in_dim] + hiddens + [out_dim]
    for i in range(len(dims) - 1):
        key, wk = jax.random.split(key)
        w = xavier_uniform(wk, (dims[i], dims[i + 1]))
        b = jnp.zeros((dims[i + 1],), jnp.float32)
        params.append((w, b))
    return params


# ---------------------------------------------------------------------------
if __name__ == "__main__":
    key = jax.random.PRNGKey(0)

    # Config-derived dims (small, consistent with the module):
    hidden_node = 16              # gnn.hidden_node
    in_dim = hidden_node * 2      # concat_states = False
    hiddens = [64, 32]            # imputation.hidden = "64_32"
    out_dim = 1                   # imputation.output

    key, k_in1, k_in2, k_par = jax.random.split(key, 4)
    N = 8  # rows being imputed
    # forward() accepts a list of tensors and concatenates them on the last axis
    x1 = jax.random.normal(k_in1, (N, hidden_node), jnp.float32)
    x2 = jax.random.normal(k_in2, (N, hidden_node), jnp.float32)

    params = init_mlpnet_params(k_par, in_dim, hiddens, out_dim)

    out = mlpnet_forward(params, [x1, x2])
    out = jax.block_until_ready(out)

    # pure-JAX reference (eval-mode dropout == identity)
    ref = jnp.concatenate([x1, x2], axis=-1)
    for li, (w, b) in enumerate(params):
        ref = ref @ w + b
        ref = jax.nn.sigmoid(ref) if li == len(params) - 1 else jnp.maximum(ref, 0.0)

    assert out.shape == (N, out_dim), out.shape
    assert jnp.allclose(out, ref, atol=1e-5, rtol=1e-5)

    print("KERNEL_OK")
</pallas_src>

<mosaic_0001>
module attributes {stable_mosaic.version = 11 : i64} {
  func.func @_fused_mlp_kernel(%arg0: i32, %arg1: memref<8x16xf32, #tpu.memory_space<vmem>>, %arg2: memref<8x16xf32, #tpu.memory_space<vmem>>, %arg3: memref<16x64xf32, #tpu.memory_space<vmem>>, %arg4: memref<16x64xf32, #tpu.memory_space<vmem>>, %arg5: memref<1x64xf32, #tpu.memory_space<vmem>>, %arg6: memref<64x32xf32, #tpu.memory_space<vmem>>, %arg7: memref<1x32xf32, #tpu.memory_space<vmem>>, %arg8: memref<32x128xf32, #tpu.memory_space<vmem>>, %arg9: memref<1x128xf32, #tpu.memory_space<vmem>>, %arg10: memref<8x128xf32, #tpu.memory_space<vmem>>) attributes {dimension_semantics = [#tpu.dimension_semantics<parallel>], iteration_bounds = array<i64: 1>, scalar_prefetch = 0 : i64, scratch_operands = 0 : i64, tpu.core_type = #tpu.core_type<tc>, window_params = [{transform_indices = @transform_0, window_bounds = array<i64: 8, 16>}, {transform_indices = @transform_1, window_bounds = array<i64: 8, 16>}, {pipeline_mode = #tpu.pipeline_mode<synchronous>, transform_indices = @transform_2, window_bounds = array<i64: 16, 64>}, {pipeline_mode = #tpu.pipeline_mode<synchronous>, transform_indices = @transform_3, window_bounds = array<i64: 16, 64>}, {pipeline_mode = #tpu.pipeline_mode<synchronous>, transform_indices = @transform_4, window_bounds = array<i64: 1, 64>}, {pipeline_mode = #tpu.pipeline_mode<synchronous>, transform_indices = @transform_5, window_bounds = array<i64: 64, 32>}, {pipeline_mode = #tpu.pipeline_mode<synchronous>, transform_indices = @transform_6, window_bounds = array<i64: 1, 32>}, {pipeline_mode = #tpu.pipeline_mode<synchronous>, transform_indices = @transform_7, window_bounds = array<i64: 32, 128>}, {pipeline_mode = #tpu.pipeline_mode<synchronous>, transform_indices = @transform_8, window_bounds = array<i64: 1, 128>}, {transform_indices = @transform_9, window_bounds = array<i64: 8, 128>}]} {
    %c0 = arith.constant 0 : index
    %c0_0 = arith.constant 0 : index
    %0 = vector.load %arg1[%c0, %c0_0] : memref<8x16xf32, #tpu.memory_space<vmem>>, vector<8x16xf32>
    %c0_1 = arith.constant 0 : index
    %c0_2 = arith.constant 0 : index
    %1 = vector.load %arg3[%c0_1, %c0_2] : memref<16x64xf32, #tpu.memory_space<vmem>>, vector<16x64xf32>
    %cst = arith.constant dense<0.000000e+00> : vector<8x64xf32>
    %2 = tpu.matmul %0, %1, %cst {dimension_numbers = #tpu.dot_dimension_numbers<[1], [0], [0], [1], [0, 0, 1, 1], [], []>} : vector<8x16xf32>, vector<16x64xf32>, vector<8x64xf32> -> vector<8x64xf32>
    %c0_3 = arith.constant 0 : index
    %c0_4 = arith.constant 0 : index
    %3 = vector.load %arg2[%c0_3, %c0_4] : memref<8x16xf32, #tpu.memory_space<vmem>>, vector<8x16xf32>
    %c0_5 = arith.constant 0 : index
    %c0_6 = arith.constant 0 : index
    %4 = vector.load %arg4[%c0_5, %c0_6] : memref<16x64xf32, #tpu.memory_space<vmem>>, vector<16x64xf32>
    %cst_7 = arith.constant dense<0.000000e+00> : vector<8x64xf32>
    %5 = tpu.matmul %3, %4, %cst_7 {dimension_numbers = #tpu.dot_dimension_numbers<[1], [0], [0], [1], [0, 0, 1, 1], [], []>} : vector<8x16xf32>, vector<16x64xf32>, vector<8x64xf32> -> vector<8x64xf32>
    %6 = arith.addf %2, %5 : vector<8x64xf32>
    %c0_8 = arith.constant 0 : index
    %c0_9 = arith.constant 0 : index
    %7 = vector.load %arg5[%c0_8, %c0_9] : memref<1x64xf32, #tpu.memory_space<vmem>>, vector<1x64xf32>
    %8 = vector.broadcast %7 : vector<1x64xf32> to vector<8x64xf32>
    %9 = arith.addf %6, %8 : vector<8x64xf32>
    %cst_10 = arith.constant 0.000000e+00 : f32
    %10 = vector.broadcast %cst_10 : f32 to vector<8x64xf32>
    %11 = arith.maximumf %9, %10 : vector<8x64xf32>
    %c0_11 = arith.constant 0 : index
    %c0_12 = arith.constant 0 : index
    %12 = vector.load %arg6[%c0_11, %c0_12] : memref<64x32xf32, #tpu.memory_space<vmem>>, vector<64x32xf32>
    %cst_13 = arith.constant dense<0.000000e+00> : vector<8x32xf32>
    %13 = tpu.matmul %11, %12, %cst_13 {dimension_numbers = #tpu.dot_dimension_numbers<[1], [0], [0], [1], [0, 0, 1, 1], [], []>} : vector<8x64xf32>, vector<64x32xf32>, vector<8x32xf32> -> vector<8x32xf32>
    %c0_14 = arith.constant 0 : index
    %c0_15 = arith.constant 0 : index
    %14 = vector.load %arg7[%c0_14, %c0_15] : memref<1x32xf32, #tpu.memory_space<vmem>>, vector<1x32xf32>
    %15 = vector.broadcast %14 : vector<1x32xf32> to vector<8x32xf32>
    %16 = arith.addf %13, %15 : vector<8x32xf32>
    %cst_16 = arith.constant 0.000000e+00 : f32
    %17 = vector.broadcast %cst_16 : f32 to vector<8x32xf32>
    %18 = arith.maximumf %16, %17 : vector<8x32xf32>
    %c0_17 = arith.constant 0 : index
    %c0_18 = arith.constant 0 : index
    %19 = vector.load %arg8[%c0_17, %c0_18] : memref<32x128xf32, #tpu.memory_space<vmem>>, vector<32x128xf32>
    %cst_19 = arith.constant dense<0.000000e+00> : vector<8x128xf32>
    %20 = tpu.matmul %18, %19, %cst_19 {dimension_numbers = #tpu.dot_dimension_numbers<[1], [0], [0], [1], [0, 0, 1, 1], [], []>} : vector<8x32xf32>, vector<32x128xf32>, vector<8x128xf32> -> vector<8x128xf32>
    %c0_20 = arith.constant 0 : index
    %c0_21 = arith.constant 0 : index
    %21 = vector.load %arg9[%c0_20, %c0_21] : memref<1x128xf32, #tpu.memory_space<vmem>>, vector<1x128xf32>
    %22 = vector.broadcast %21 : vector<1x128xf32> to vector<8x128xf32>
    %23 = arith.addf %20, %22 : vector<8x128xf32>
    %24 = arith.negf %23 : vector<8x128xf32>
    %25 = math.exp %24 : vector<8x128xf32>
    %cst_22 = arith.constant 1.000000e+00 : f32
    %26 = vector.broadcast %cst_22 : f32 to vector<8x128xf32>
    %27 = arith.addf %26, %25 : vector<8x128xf32>
    %28 = arith.divf %26, %27 : vector<8x128xf32>
    %c0_23 = arith.constant 0 : index
    %c0_24 = arith.constant 0 : index
    %29 = vector.load %arg10[%c0_23, %c0_24] : memref<8x128xf32, #tpu.memory_space<vmem>>, vector<8x128xf32>
    tpu.vector_store %arg10[%c0_23, %c0_24], %28 {strides = array<i32>} : memref<8x128xf32, #tpu.memory_space<vmem>>, vector<8x128xf32>,
    return
  }
  func.func @transform_0(%arg0: i32) -> (i32, i32) {
    %c0_i32 = arith.constant 0 : i32
    %c0_i32_0 = arith.constant 0 : i32
    return %arg0, %c0_i32 : i32, i32
  }
  func.func @transform_1(%arg0: i32) -> (i32, i32) {
    %c0_i32 = arith.constant 0 : i32
    %c0_i32_0 = arith.constant 0 : i32
    return %arg0, %c0_i32 : i32, i32
  }
  func.func @transform_2(%arg0: i32) -> (i32, i32) {
    %c0_i32 = arith.constant 0 : i32
    %c0_i32_0 = arith.constant 0 : i32
    %c0_i32_1 = arith.constant 0 : i32
    return %c0_i32, %c0_i32_0 : i32, i32
  }
  func.func @transform_3(%arg0: i32) -> (i32, i32) {
    %c0_i32 = arith.constant 0 : i32
    %c0_i32_0 = arith.constant 0 : i32
    %c0_i32_1 = arith.constant 0 : i32
    return %c0_i32, %c0_i32_0 : i32, i32
  }
  func.func @transform_4(%arg0: i32) -> (i32, i32) {
    %c0_i32 = arith.constant 0 : i32
    %c0_i32_0 = arith.constant 0 : i32
    %c0_i32_1 = arith.constant 0 : i32
    return %c0_i32, %c0_i32_0 : i32, i32
  }
  func.func @transform_5(%arg0: i32) -> (i32, i32) {
    %c0_i32 = arith.constant 0 : i32
    %c0_i32_0 = arith.constant 0 : i32
    %c0_i32_1 = arith.constant 0 : i32
    return %c0_i32, %c0_i32_0 : i32, i32
  }
  func.func @transform_6(%arg0: i32) -> (i32, i32) {
    %c0_i32 = arith.constant 0 : i32
    %c0_i32_0 = arith.constant 0 : i32
    %c0_i32_1 = arith.constant 0 : i32
    return %c0_i32, %c0_i32_0 : i32, i32
  }
  func.func @transform_7(%arg0: i32) -> (i32, i32) {
    %c0_i32 = arith.constant 0 : i32
    %c0_i32_0 = arith.constant 0 : i32
    %c0_i32_1 = arith.constant 0 : i32
    return %c0_i32, %c0_i32_0 : i32, i32
  }
  func.func @transform_8(%arg0: i32) -> (i32, i32) {
    %c0_i32 = arith.constant 0 : i32
    %c0_i32_0 = arith.constant 0 : i32
    %c0_i32_1 = arith.constant 0 : i32
    return %c0_i32, %c0_i32_0 : i32, i32
  }
  func.func @transform_9(%arg0: i32) -> (i32, i32) {
    %c0_i32 = arith.constant 0 : i32
    %c0_i32_0 = arith.constant 0 : i32
    return %arg0, %c0_i32 : i32, i32
  }
}

</mosaic_0001>

<bundles_post_ra>
// kernel: tpu_custom_call.1
= control target key start
LH: loop header
LB: loop body
LE: loop exit
PB: predicated region body
PF: predicated region fallthrough
CT: control target
= control target key end

     0   :  { %v519_v2 = vmov 0.0|0.0   ;;  %vm520_vm0 = vmmov 0   ;;  %v521_v4 = vmov 0.0   ;;  %s652_s0 = inlined_call_operand.vmem [shape: f32[8,16], index: 0, kind: input, shape index: {}]   ;;  %s653_s1 = inlined_call_operand.vmem [shape: f32[8,16], index: 1, kind: input, shape index: {}]   ;;  %s654_s2 = inlined_call_operand.vmem [shape: f32[16,64], index: 2, kind: input, shape index: {}]   ;;  %s655_s3 = inlined_call_operand.vmem [shape: f32[16,64], index: 3, kind: input, shape index: {}]   ;;  %s656_s4 = inlined_call_operand.vmem [shape: f32[1,64], index: 4, kind: input, shape index: {}]   ;;  %s657_s5 = inlined_call_operand.vmem [shape: f32[64,32], index: 5, kind: input, shape index: {}]   ;;  %s658_s6 = inlined_call_operand.vmem [shape: f32[1,32], index: 6, kind: input, shape index: {}]   ;;  %s659_s7 = inlined_call_operand.vmem [shape: f32[32,128], index: 7, kind: input, shape index: {}]   ;;  %s660_s8 = inlined_call_operand.vmem [shape: f32[1,128], index: 8, kind: input, shape index: {}]   ;;  %s661_s9 = inlined_call_operand.hbm [shape: f32[8,128], index: 9, kind: output, shape index: {}]  }
   0x1   :  { %v37_v0 = vld [vmem:[%s655_s3] sm:$0xff]  ;;  %v38_v1 = vld [vmem:[%s655_s3 + $0x8] sm:$0xff]  ;;  %463 = vmatprep.subr.bf16.mxu1 %v519_v2  ;;  %423 = vmatprep.mubr.msk.f32.mxu1 %vm520_vm0, %v521_v4 }
   0x2   :  { %v464_v3 = vpack.c.bf16 %v38_v1, %v37_v0  ;;  %v34_v5 = vld [vmem:[%s654_s2] sm:$0xff]  ;;  %v35_v6 = vld [vmem:[%s654_s2 + $0x8] sm:$0xff]  ;;  %469 = vmatprep.subr.bf16.mxu0 %v519_v2  ;;  %449 = vmatprep.mubr.msk.f32.mxu0 %vm520_vm0, %v521_v4 }
   0x3   :  { %v195_v7 = vld [vmem:[%s657_s5] sm:$0xff]  ;;  %v196_v8 = vld [vmem:[%s657_s5 + $0x8] sm:$0xff] }
   0x4   :  { %14 = vsyncpa [#allocation3], 0  ;;  %465 = vmatpush3.bf16.msra.mxu1 %v464_v3  ;;  %v36_v9 = vld [vmem:[%s653_s1] sm:$0xff]  ;;  %vm39_vm1 = vcmask 130048   ;;  %v467_v10 = vpack.c.bf16 %v35_v6, %v34_v5  ;;  %v470_v11 = vpack.c.bf16 %v196_v8, %v195_v7  ;;  %v197_v13 = vld [vmem:[%s657_s5 + $0x10] sm:$0xff]  ;;  %vm210_vm2 = vcmask 523264  }
   0x5   :  { %466 = vmatprep.subr.bf16.mxu1 %v519_v2  ;;  %v33_v12 = vld [vmem:[%s652_s0] sm:$0xff]  ;;  %v198_v14 = vld [vmem:[%s657_s5 + $0x18] sm:$0xff]  ;;  %v200_v17 = vld [vmem:[%s657_s5 + $0x28] sm:$0xff]  ;;  %vm296_vm3 = vcmask 261120  }
   0x6   :  { %471 = vmatpush3.bf16.msra.mxu0 %v470_v11  ;;  %v473_v15 = vpack.c.bf16 %v198_v14, %v197_v13  ;;  %v199_v16 = vld [vmem:[%s657_s5 + $0x20] sm:$0xff]  ;;  %v201_v19 = vld [vmem:[%s657_s5 + $0x30] sm:$0xff]  ;;  %v202_v20 = vld [vmem:[%s657_s5 + $0x38] sm:$0xff] }
   0x7   :  { %424 = vmatmul.mubr.msk.f32.vlgmr.msra.gmra.mrb[0].mxu1 %vm39_vm1, %v36_v9  ;;  %472 = vmatprep.subr.bf16.mxu0 %v519_v2  ;;  %v476_v18 = vpack.c.bf16 %v200_v17, %v199_v16  ;;  %v479_v21 = vpack.c.bf16 %v202_v20, %v201_v19  ;;  %v285_v22 = vld [vmem:[%s659_s7] sm:$0xff]  ;;  %v286_v23 = vld [vmem:[%s659_s7 + $0x8] sm:$0xff]  ;;  %v287_v33 = vld [vmem:[%s659_s7 + $0x10] sm:$0xff] }
   0x8   :  { %468 = vmatpush3.bf16.msra.mxu1 %v467_v10  ;;  %430 = vmatprep.mubr.msk.f32.mxu1 %vm520_vm0, %v521_v4  ;;  %v482_v24 = vpack.c.bf16 %v286_v23, %v285_v22  ;;  %v393_v28 = vld [vmem:[%s656_s4] ss:$0 sm:$0xff]  ;;  %v288_v34 = vld [vmem:[%s659_s7 + $0x18] sm:$0xff]  ;;  %s522_s7 = smov [#allocation2]  }
   0x9   :  { %481 = vmatprep.subr.bf16.mxu1 %v519_v2  ;;  %v485_v35 = vpack.c.bf16 %v288_v34, %v287_v33  ;;  %v394_v36 = vld [vmem:[%s658_s6] ss:$0 sm:$0xff]  ;;  %s383_s6 = sshll.u32 %s522_s7, 4  ;;  %s384_s6 = int_to_ptr.vmem [resolvable:$true] %s383_s6 }
   0xa   :  { %474 = vmatpush3.bf16.msra.mxu0 %v473_v15  ;;  %v396_v41 = vld [vmem:[%s660_s8] ss:$0 sm:$0xff]  ;;  %s495_s22 = scalar_lea.vmem %s384_s6, 128  ;;  %p500_p1 = scmp.lt.s32.totalorder %s384_s6, %s384_s6 }
   0xb   :  { %431 = vmatmul.mubr.msk.f32.vlgmr.msra.gmra.mrb[2].mxu1 %vm39_vm1, %v33_v12  ;;  %475 = vmatprep.subr.bf16.mxu0 %v519_v2  ;;  %p496_p0 = scmp.ne.s32.totalorder %s384_s6, %s495_s22  ;;  %p501_p2 = scmp.lt.s32.totalorder %s495_s22, %s495_s22 }
   0xc   :  { %460 = vmatprep.mubr.msk.f32.mxu1 %vm520_vm0, %v521_v4  ;;  %483 = vmatpush3.bf16.msra.mxu1 %v482_v24 }
   0xd   :  { %484 = vmatprep.subr.bf16.mxu1 %v519_v2  ;;  %p502_p3 = por %p501_p2, %p500_p1 }
   0xe   :  { %477 = vmatpush3.bf16.msra.mxu0 %v476_v18 }
   0xf   :  { %478 = vmatprep.subr.bf16.mxu0 %v519_v2  ;;  %p503_p4 = pnand %p502_p3, %p496_p0 }
  0x10   :  { %486 = vmatpush3.bf16.msra.mxu1 %v485_v35 }
  0x12   :  { %480 = vmatpush3.bf16.msra.mxu0 %v479_v21 }
  0xda   :  { %v109_v25 = vpop.f32.mrb[0].mxu1 }
  0xdb   :  { %v425_v26 = vpop.f32.mrb[1].mxu1 }
  0xde   :  { %v182_v27 = vpop.f32.mrb[2].mxu1 }
  0xdf   :  { %v183_v29 = vadd.f32 %v182_v27, %v109_v25  ;;  %v432_v30 = vpop.f32.mrb[3].mxu1 }
  0xe1   :  { %v193_v31 = vadd.f32 %v393_v28, %v183_v29 }
  0xe3   :  { %v194_v32 = vmax.f32 %v193_v31, 0.0 }
  0xe5   :  { %450 = vmatmul.mubr.msk.f32.vlgmr.msra.gmra.mrb[0].mxu0 %vm210_vm2, %v194_v32 }
 0x1b8   :  { %v280_v37 = vpop.f32.mrb[0].mxu0 }
 0x1b9   :  { %v281_v38 = vadd.f32 %v394_v36, %v280_v37  ;;  %v451_v39 = vpop.f32.mrb[1].mxu0 }
 0x1bb   :  { %v284_v40 = vmax.f32 %v281_v38, 0.0 }
 0x1bd   :  { %461 = vmatmul.mubr.msk.f32.vlgmr.msra.gmra.mrb[4].mxu1 %vm296_vm3, %v284_v40 }
 0x290   :  { %v366_v42 = vpop.f32.mrb[4].mxu1 }
 0x291   :  { %v367_v43 = vadd.f32 %v396_v41, %v366_v42  ;;  %v462_v44 = vpop.f32.mrb[5].mxu1 }
 0x293   :  { %v398_v45 = vmul.f32 -1.442695, %v367_v43 }
 0x295   :  { %491 = vpow2.f32 %v398_v45 }
 0x29f   :  { %v492_v46 = vpop.eup %491 }
 0x2a0   :  { %v373_v47 = vadd.f32 1.0, %v492_v46 }
 0x2a2   :  { %493 = vrcp.f32 %v373_v47 }
 0x2ac   :  { %v494_v48 = vpop.eup %493 }
 0x2ad   :  { %376 = vst [vmem:[#allocation2] sm:$0xff] %v494_v48 }
 0x2ae   :  { %506 = shalt.err (!%p503_p4)
}
 0x2af   :  { %s507_s1 = scalar_lea.hbm %s661_s9, 128 }
 0x2b0   :  { %p508_p5 = scmp.ne.s32.totalorder %s661_s9, %s507_s1  ;;  %p511_p6 = scmp.lt.u32.totalorder %s507_s1, %s661_s9 }
 0x2b2   :  { %p513_p7 = pnand %p511_p6, %p508_p5 }
 0x2b4   :  { %516 = shalt.err (!%p513_p7)
}
 0x2b5   :  { %386 = dma.vmem_to_hbm [thread:$0]  %s384_s6, 128, %s661_s9, [#allocation3]  }
 0x2b6   :  { %517 = dma.done.wait [#allocation3], 128  }
 0x2b7   :  { %518 = vsyncadd [#allocation3], 4294967168 }
 0x2b8   :  { %390 = vsyncpa [#allocation3], 1 }

</bundles_post_ra>
